<compile_context>
chip_gen: v7x
topology: tpu7x:2x2x1
jax: 0.10.0
libtpu: 0.0.40
codegen_flags: <defaults>
</compile_context>

<pallas_src>
import jax
import jax.numpy as jnp
import numpy as np
from jax import lax
from jax.experimental import pallas as pl
from jax.experimental.pallas import tpu as pltpu

OUTPUT_DIM = 48
PV_DIM = 12
SOLAR_STEPS = 6                      # 6 timesteps x (elevation, azimuth)
SOLAR_DIM = SOLAR_STEPS * 2
META_DIM = 5                         # lat, lon, orientation, tilt, kwp
IN_DIM = PV_DIM + SOLAR_DIM + META_DIM   # 29, matches nn.Linear(12 + 5 + 12, 48)

# TODO(synk): util.site_normalize is not available; a deterministic fixed
# per-field scaling stands in for it.  It is folded into the meta weight rows
# at trace time, so substituting the real constants later is a one-line change.
_META_NORM = np.array([1.0 / 90.0, 1.0 / 180.0, 1.0 / 360.0, 1.0 / 90.0, 1.0 / 10.0],
                      dtype=np.float32)


def _meta_and_pv_kernel(pv_ref, sol_ref, meta_ref, w_pv_ref, w_sol_ref,
                        w_meta_ref, b_ref, o_ref):
    f32 = jnp.float32

    # ---- solar masking: torch does solar[solar[:, :, 0] < 0] = 0, i.e. zero both
    # (elevation, azimuth) of a timestep whose elevation < 0.  Explicit f32
    # compare path (v5e VPU has no bf16).  Parity constants are (1, 12) only.
    sol_f32 = sol_ref[...].astype(f32)                                   # (TM, 12)
    rolled = pltpu.roll(sol_f32, shift=1, axis=1)                        # [:, j] = sol[:, j-1]
    even = (lax.broadcasted_iota(jnp.int32, (1, SOLAR_DIM), 1) % 2 == 0).astype(f32)
    elev = sol_f32 * even + rolled * (1.0 - even)                        # elevation on its pair
    sol_masked = jnp.where(elev < 0.0, 0.0, sol_f32).astype(w_sol_ref.dtype)

    # ---- Linear(29, 48): three MXU dots sharing one f32 accumulation chain,
    # fused bias + ReLU.  Meta normalization is pre-folded into w_meta rows.
    acc = jnp.dot(pv_ref[...], w_pv_ref[...], preferred_element_type=f32)
    acc = acc + jnp.dot(sol_masked, w_sol_ref[...], preferred_element_type=f32)
    acc = acc + jnp.dot(meta_ref[...], w_meta_ref[...], preferred_element_type=f32)
    acc = acc + b_ref[...]                                               # (1, 48) f32 broadcast
    o_ref[...] = jnp.maximum(acc, 0.0).astype(o_ref.dtype)


def _chip_defaults():
    """(block_rows, vmem_limit_bytes, core_parallel) per TPU generation."""
    kind = ""
    try:
        kind = jax.devices()[0].device_kind.lower()
    except Exception:
        pass
    if "v7" in kind or "7x" in kind:
        # 64 MiB physical VMEM, 2 TensorCores.  4096 rows keeps the lane-padded
        # (tm,128) pipeline buffers + in-kernel f32 temporaries inside a 40 MiB
        # scoped limit; CORE_PARALLEL shards grid steps across both cores.
        return 4096, 40 << 20, True
    if "v5" in kind:
        # 16 MiB default scoped VMEM; stay small but lift the limit a bit.
        return 1024, 32 << 20, False
    if "v6" in kind:
        return 4096, 64 << 20, False
    return 2048, None, False


def meta_and_pv_forward(pv, solar_angles, lat, lon, orientation, tilt, kwp,
                        weight, bias, *, block_rows=None, out_dtype=None,
                        core_parallel=None, vmem_limit_bytes=None):
    """pv: (B, 12); solar_angles: (B, 6, 2); lat/lon/orientation/tilt/kwp: (B,);
    weight: (29, 48) (= torch (48, 29) transposed); bias: (48,).
    Activations may be float32 or bfloat16; accumulation is float32.
    out_dtype defaults to the activation dtype."""
    B = pv.shape[0]
    act_dtype = pv.dtype
    act_itemsize = jnp.dtype(act_dtype).itemsize
    if out_dtype is None:
        out_dtype = act_dtype
    out_itemsize = jnp.dtype(out_dtype).itemsize

    d_rows, d_vmem, d_corepar = _chip_defaults()
    if block_rows is None:
        block_rows = d_rows
    if vmem_limit_bytes is None:
        vmem_limit_bytes = d_vmem
    if core_parallel is None:
        core_parallel = d_corepar

    # Batch tiling without wrapper padding: one full-array block (legal for any
    # B since block dims equal the array dims), or a multiple-of-16 tile with a
    # ragged, store-masked last block (no cross-row reduction -> safe).
    if B <= block_rows:
        tm = B
    else:
        tm = max(16, (int(block_rows) // 16) * 16)
    grid = (pl.cdiv(B, tm),)

    # Pack the five site-meta scalars into one (B, 5) array: one dense block,
    # one DMA per step instead of five lane-padded (tm,1)->(tm,128) buffers.
    meta = jnp.stack([lat, lon, orientation, tilt, kwp], axis=-1).astype(act_dtype)
    sol = solar_angles.reshape(B, SOLAR_DIM)        # row-major reshape: free

    # Weight slices for concat((pv, solar, meta)) layout, cast to the activation
    # dtype so bf16 activations hit the MXU natively (f32 accumulate).
    w = weight.astype(jnp.float32)
    w_pv = w[:PV_DIM].astype(act_dtype)                                   # (12, 48)
    w_sol = w[PV_DIM:PV_DIM + SOLAR_DIM].astype(act_dtype)                # (12, 48)
    w_meta = (w[PV_DIM + SOLAR_DIM:]
              * jnp.asarray(_META_NORM)[:, None]).astype(act_dtype)       # (5, 48)
    b2 = bias.reshape(1, OUTPUT_DIM).astype(jnp.float32)

    def row_spec(feat):
        return pl.BlockSpec((tm, feat), lambda i: (i, 0))

    def resident(shape):
        return pl.BlockSpec(shape, lambda i: (0, 0))

    sem = pltpu.CORE_PARALLEL if (core_parallel and grid[0] > 1) else pltpu.PARALLEL

    cost = pl.CostEstimate(
        flops=2 * B * IN_DIM * OUTPUT_DIM,
        transcendentals=0,
        bytes_accessed=int(B * IN_DIM * act_itemsize
                           + IN_DIM * OUTPUT_DIM * act_itemsize + OUTPUT_DIM * 4
                           + B * OUTPUT_DIM * out_itemsize))

    return pl.pallas_call(
        _meta_and_pv_kernel,
        out_shape=jax.ShapeDtypeStruct((B, OUTPUT_DIM), out_dtype),
        grid=grid,
        in_specs=[
            row_spec(PV_DIM),                      # pv    (tm, 12)
            row_spec(SOLAR_DIM),                   # solar (tm, 12)
            row_spec(META_DIM),                    # meta  (tm, 5) packed
            resident((PV_DIM, OUTPUT_DIM)),        # w_pv   (resident)
            resident((SOLAR_DIM, OUTPUT_DIM)),     # w_sol  (resident)
            resident((META_DIM, OUTPUT_DIM)),      # w_meta (resident, norm folded)
            resident((1, OUTPUT_DIM)),             # bias   (resident, f32)
        ],
        out_specs=row_spec(OUTPUT_DIM),
        compiler_params=pltpu.CompilerParams(
            dimension_semantics=(sem,),
            vmem_limit_bytes=vmem_limit_bytes),
        cost_estimate=cost,
    )(pv, sol, meta, w_pv, w_sol, w_meta, b2)


def _reference(pv, solar_angles, lat, lon, orientation, tilt, kwp, weight, bias):
    B = pv.shape[0]
    meta = jnp.stack([lat, lon, orientation, tilt, kwp], axis=-1).astype(jnp.float32)
    meta = meta * jnp.asarray(_META_NORM)
    mask = solar_angles[:, :, 0:1] < 0
    sol = jnp.where(mask, 0.0, solar_angles.astype(jnp.float32)).reshape(B, SOLAR_DIM)
    feats = jnp.concatenate([pv.astype(jnp.float32), sol, meta], axis=-1)  # (B, 29)
    return jnp.maximum(feats @ weight + bias, 0.0)


if __name__ == "__main__":
    root = jax.random.PRNGKey(0)
    wkey, bkey, k0, k1, k2, k3 = jax.random.split(root, 6)

    bound = 1.0 / np.sqrt(IN_DIM)
    weight = jax.random.uniform(wkey, (IN_DIM, OUTPUT_DIM), jnp.float32, -bound, bound)
    bias = jax.random.uniform(bkey, (OUTPUT_DIM,), jnp.float32, -bound, bound)

    def run_case(case_key, B, act_dtype, block_rows, rtol, atol, out_dtype=None):
        ks = jax.random.split(case_key, 7)
        pv = jax.random.uniform(ks[0], (B, PV_DIM), jnp.float32)
        solar = jax.random.normal(ks[1], (B, SOLAR_STEPS, 2), jnp.float32) * 45.0
        lat = jax.random.uniform(ks[2], (B,), jnp.float32, -90.0, 90.0)
        lon = jax.random.uniform(ks[3], (B,), jnp.float32, -180.0, 180.0)
        ori = jax.random.uniform(ks[4], (B,), jnp.float32, 0.0, 360.0)
        tilt = jax.random.uniform(ks[5], (B,), jnp.float32, 0.0, 90.0)
        kwp = jax.random.uniform(ks[6], (B,), jnp.float32, 0.0, 10.0)

        acts = [a.astype(act_dtype) for a in (pv, solar, lat, lon, ori, tilt, kwp)]
        out = meta_and_pv_forward(*acts, weight, bias,
                                  block_rows=block_rows, out_dtype=out_dtype)
        out = jax.block_until_ready(out)

        # Reference at matching compute precision (kernel casts weights to the
        # activation dtype so bf16 activations feed the MXU natively).
        w_ref = weight.astype(act_dtype).astype(jnp.float32)
        ref = _reference(*acts, w_ref, bias)
        assert out.shape == (B, OUTPUT_DIM)
        out_f32 = np.asarray(out.astype(jnp.float32))
        np.testing.assert_allclose(out_f32, np.asarray(ref), rtol=rtol, atol=atol)

    # tiny batch, single full-array block, chip-default tiling path
    run_case(k0, 8,   jnp.float32,  None, 1e-4, 1e-3)
    # multi-step grid with ragged (store-masked) last block: 200 = 3*64 + 8
    run_case(k1, 200, jnp.float32,  64,   1e-4, 1e-3)
    # bf16 activations + bf16 output (native MXU bf16, halved HBM traffic)
    run_case(k2, 200, jnp.bfloat16, 64,   2e-2, 2e-2)
    # f32 activations with bf16 writeback (out_dtype plumbing)
    run_case(k3, 200, jnp.float32,  64,   2e-2, 2e-2, out_dtype=jnp.bfloat16)

    print("KERNEL_OK")
</pallas_src>

<mosaic_0001>
module attributes {stable_mosaic.version = 11 : i64} {
  func.func @_meta_and_pv_kernel(%arg0: i32, %arg1: memref<8x12xf32, #tpu.memory_space<vmem>>, %arg2: memref<8x12xf32, #tpu.memory_space<vmem>>, %arg3: memref<8x5xf32, #tpu.memory_space<vmem>>, %arg4: memref<12x48xf32, #tpu.memory_space<vmem>>, %arg5: memref<12x48xf32, #tpu.memory_space<vmem>>, %arg6: memref<5x48xf32, #tpu.memory_space<vmem>>, %arg7: memref<1x48xf32, #tpu.memory_space<vmem>>, %arg8: memref<8x48xf32, #tpu.memory_space<vmem>>) attributes {dimension_semantics = [#tpu.dimension_semantics<parallel>], iteration_bounds = array<i64: 1>, scalar_prefetch = 0 : i64, scratch_operands = 0 : i64, tpu.core_type = #tpu.core_type<tc>, window_params = [{transform_indices = @transform_0, window_bounds = array<i64: 8, 12>}, {transform_indices = @transform_1, window_bounds = array<i64: 8, 12>}, {transform_indices = @transform_2, window_bounds = array<i64: 8, 5>}, {pipeline_mode = #tpu.pipeline_mode<synchronous>, transform_indices = @transform_3, window_bounds = array<i64: 12, 48>}, {pipeline_mode = #tpu.pipeline_mode<synchronous>, transform_indices = @transform_4, window_bounds = array<i64: 12, 48>}, {pipeline_mode = #tpu.pipeline_mode<synchronous>, transform_indices = @transform_5, window_bounds = array<i64: 5, 48>}, {pipeline_mode = #tpu.pipeline_mode<synchronous>, transform_indices = @transform_6, window_bounds = array<i64: 1, 48>}, {transform_indices = @transform_7, window_bounds = array<i64: 8, 48>}]} {
    %c0 = arith.constant 0 : index
    %c0_0 = arith.constant 0 : index
    %0 = vector.load %arg2[%c0, %c0_0] : memref<8x12xf32, #tpu.memory_space<vmem>>, vector<8x12xf32>
    %c1_i32 = arith.constant 1 : i32
    %1 = tpu.dynamic_rotate %0 by %c1_i32 dim 1 : vector<8x12xf32>, i32 -> vector<8x12xf32>
    %2 = tpu.iota {dimensions = array<i32: 1>} : vector<1x12xi32>
    %c2_i32 = arith.constant 2 : i32
    %c0_i32 = arith.constant 0 : i32
    %3 = arith.cmpi eq, %c2_i32, %c0_i32 : i32
    %c1_i32_1 = arith.constant 1 : i32
    %4 = arith.select %3, %c1_i32_1, %c2_i32 : i32
    %5 = vector.broadcast %4 : i32 to vector<1x12xi32>
    %6 = arith.remsi %2, %5 : vector<1x12xi32>
    %c0_i32_2 = arith.constant 0 : i32
    %7 = vector.broadcast %c0_i32_2 : i32 to vector<1x12xi32>
    %8 = arith.cmpi ne, %6, %7 : vector<1x12xi32>
    %c0_i32_3 = arith.constant 0 : i32
    %9 = vector.broadcast %c0_i32_3 : i32 to vector<1x12xi32>
    %10 = arith.cmpi slt, %6, %9 : vector<1x12xi32>
    %c0_i32_4 = arith.constant 0 : i32
    %11 = arith.cmpi slt, %4, %c0_i32_4 : i32
    %12 = vector.broadcast %11 : i1 to vector<1x12xi1>
    %13 = vector.broadcast %12 : vector<1x12xi1> to vector<1x12xi1>
    %14 = arith.xori %10, %13 : vector<1x12xi1>
    %15 = arith.andi %14, %8 : vector<1x12xi1>
    %16 = vector.broadcast %4 : i32 to vector<1x12xi32>
    %17 = arith.addi %6, %16 : vector<1x12xi32>
    %18 = arith.select %15, %17, %6 : vector<1x12xi1>, vector<1x12xi32>
    %c0_i32_5 = arith.constant 0 : i32
    %19 = vector.broadcast %c0_i32_5 : i32 to vector<1x12xi32>
    %20 = arith.cmpi eq, %18, %19 : vector<1x12xi32>
    %21 = arith.extui %20 : vector<1x12xi1> to vector<1x12xi32>
    %22 = arith.sitofp %21 : vector<1x12xi32> to vector<1x12xf32>
    %23 = vector.broadcast %22 : vector<1x12xf32> to vector<8x12xf32>
    %24 = arith.mulf %0, %23 : vector<8x12xf32>
    %cst = arith.constant 1.000000e+00 : f32
    %25 = vector.broadcast %cst : f32 to vector<1x12xf32>
    %26 = arith.subf %25, %22 : vector<1x12xf32>
    %27 = vector.broadcast %26 : vector<1x12xf32> to vector<8x12xf32>
    %28 = arith.mulf %1, %27 : vector<8x12xf32>
    %29 = arith.addf %24, %28 : vector<8x12xf32>
    %cst_6 = arith.constant 0.000000e+00 : f32
    %30 = vector.broadcast %cst_6 : f32 to vector<8x12xf32>
    %31 = arith.cmpf olt, %29, %30 : vector<8x12xf32>
    %cst_7 = arith.constant 0.000000e+00 : f32
    %32 = vector.broadcast %cst_7 : f32 to vector<8x12xf32>
    %33 = arith.select %31, %32, %0 : vector<8x12xi1>, vector<8x12xf32>
    %c0_8 = arith.constant 0 : index
    %c0_9 = arith.constant 0 : index
    %34 = vector.load %arg1[%c0_8, %c0_9] : memref<8x12xf32, #tpu.memory_space<vmem>>, vector<8x12xf32>
    %c0_10 = arith.constant 0 : index
    %c0_11 = arith.constant 0 : index
    %35 = vector.load %arg4[%c0_10, %c0_11] : memref<12x48xf32, #tpu.memory_space<vmem>>, vector<12x48xf32>
    %cst_12 = arith.constant dense<0.000000e+00> : vector<8x48xf32>
    %36 = tpu.matmul %34, %35, %cst_12 {dimension_numbers = #tpu.dot_dimension_numbers<[1], [0], [0], [1], [0, 0, 1, 1], [], []>} : vector<8x12xf32>, vector<12x48xf32>, vector<8x48xf32> -> vector<8x48xf32>
    %c0_13 = arith.constant 0 : index
    %c0_14 = arith.constant 0 : index
    %37 = vector.load %arg5[%c0_13, %c0_14] : memref<12x48xf32, #tpu.memory_space<vmem>>, vector<12x48xf32>
    %cst_15 = arith.constant dense<0.000000e+00> : vector<8x48xf32>
    %38 = tpu.matmul %33, %37, %cst_15 {dimension_numbers = #tpu.dot_dimension_numbers<[1], [0], [0], [1], [0, 0, 1, 1], [], []>} : vector<8x12xf32>, vector<12x48xf32>, vector<8x48xf32> -> vector<8x48xf32>
    %39 = arith.addf %36, %38 : vector<8x48xf32>
    %c0_16 = arith.constant 0 : index
    %c0_17 = arith.constant 0 : index
    %40 = vector.load %arg3[%c0_16, %c0_17] : memref<8x5xf32, #tpu.memory_space<vmem>>, vector<8x5xf32>
    %c0_18 = arith.constant 0 : index
    %c0_19 = arith.constant 0 : index
    %41 = vector.load %arg6[%c0_18, %c0_19] : memref<5x48xf32, #tpu.memory_space<vmem>>, vector<5x48xf32>
    %cst_20 = arith.constant dense<0.000000e+00> : vector<8x48xf32>
    %42 = tpu.matmul %40, %41, %cst_20 {dimension_numbers = #tpu.dot_dimension_numbers<[1], [0], [0], [1], [0, 0, 1, 1], [], []>} : vector<8x5xf32>, vector<5x48xf32>, vector<8x48xf32> -> vector<8x48xf32>
    %43 = arith.addf %39, %42 : vector<8x48xf32>
    %c0_21 = arith.constant 0 : index
    %c0_22 = arith.constant 0 : index
    %44 = vector.load %arg7[%c0_21, %c0_22] : memref<1x48xf32, #tpu.memory_space<vmem>>, vector<1x48xf32>
    %45 = vector.broadcast %44 : vector<1x48xf32> to vector<8x48xf32>
    %46 = arith.addf %43, %45 : vector<8x48xf32>
    %cst_23 = arith.constant 0.000000e+00 : f32
    %47 = vector.broadcast %cst_23 : f32 to vector<8x48xf32>
    %48 = arith.maximumf %46, %47 : vector<8x48xf32>
    %c0_24 = arith.constant 0 : index
    %c0_25 = arith.constant 0 : index
    %49 = vector.load %arg8[%c0_24, %c0_25] : memref<8x48xf32, #tpu.memory_space<vmem>>, vector<8x48xf32>
    tpu.vector_store %arg8[%c0_24, %c0_25], %48 {strides = array<i32>} : memref<8x48xf32, #tpu.memory_space<vmem>>, vector<8x48xf32>,
    return
  }
  func.func @transform_0(%arg0: i32) -> (i32, i32) {
    %c0_i32 = arith.constant 0 : i32
    %c0_i32_0 = arith.constant 0 : i32
    return %arg0, %c0_i32 : i32, i32
  }
  func.func @transform_1(%arg0: i32) -> (i32, i32) {
    %c0_i32 = arith.constant 0 : i32
    %c0_i32_0 = arith.constant 0 : i32
    return %arg0, %c0_i32 : i32, i32
  }
  func.func @transform_2(%arg0: i32) -> (i32, i32) {
    %c0_i32 = arith.constant 0 : i32
    %c0_i32_0 = arith.constant 0 : i32
    return %arg0, %c0_i32 : i32, i32
  }
  func.func @transform_3(%arg0: i32) -> (i32, i32) {
    %c0_i32 = arith.constant 0 : i32
    %c0_i32_0 = arith.constant 0 : i32
    %c0_i32_1 = arith.constant 0 : i32
    return %c0_i32, %c0_i32_0 : i32, i32
  }
  func.func @transform_4(%arg0: i32) -> (i32, i32) {
    %c0_i32 = arith.constant 0 : i32
    %c0_i32_0 = arith.constant 0 : i32
    %c0_i32_1 = arith.constant 0 : i32
    return %c0_i32, %c0_i32_0 : i32, i32
  }
  func.func @transform_5(%arg0: i32) -> (i32, i32) {
    %c0_i32 = arith.constant 0 : i32
    %c0_i32_0 = arith.constant 0 : i32
    %c0_i32_1 = arith.constant 0 : i32
    return %c0_i32, %c0_i32_0 : i32, i32
  }
  func.func @transform_6(%arg0: i32) -> (i32, i32) {
    %c0_i32 = arith.constant 0 : i32
    %c0_i32_0 = arith.constant 0 : i32
    %c0_i32_1 = arith.constant 0 : i32
    return %c0_i32, %c0_i32_0 : i32, i32
  }
  func.func @transform_7(%arg0: i32) -> (i32, i32) {
    %c0_i32 = arith.constant 0 : i32
    %c0_i32_0 = arith.constant 0 : i32
    return %arg0, %c0_i32 : i32, i32
  }
}

</mosaic_0001>

<bundles_post_ra>
// kernel: tpu_custom_call.1
= control target key start
LH: loop header
LB: loop body
LE: loop exit
PB: predicated region body
PF: predicated region fallthrough
CT: control target
= control target key end

     0   :  { %12 = vsyncpa [#allocation3], 0  ;;  %s747_s0 = inlined_call_operand.hbm [shape: f32[8,12], index: 0, kind: input, shape index: {}]   ;;  %s748_s1 = inlined_call_operand.hbm [shape: f32[8,12], index: 1, kind: input, shape index: {}]   ;;  %s749_s2 = inlined_call_operand.hbm [shape: f32[8,5], index: 2, kind: input, shape index: {}]   ;;  %s750_s3 = inlined_call_operand.hbm [shape: f32[12,48], index: 3, kind: input, shape index: {}]   ;;  %s751_s4 = inlined_call_operand.hbm [shape: f32[12,48], index: 4, kind: input, shape index: {}]   ;;  %s752_s5 = inlined_call_operand.vmem [shape: f32[5,48], index: 5, kind: input, shape index: {}]   ;;  %s753_s6 = inlined_call_operand.vmem [shape: f32[1,48], index: 6, kind: input, shape index: {}]   ;;  %s754_s7 = inlined_call_operand.hbm [shape: f32[8,48], index: 7, kind: output, shape index: {}]  }
   0x1   :  { %13 = vsyncpa [#allocation6], 0 }
   0x2   :  { %14 = vsyncpa [#allocation9], 0 }
   0x3   :  { %15 = vsyncpa [#allocation4], 0  ;;  %s594_s24 = smov [#allocation5]   ;;  %s595_s26 = smov [#allocation8]  }
   0x4   :  { %s32_s25 = sshll.u32 %s594_s24, 4  ;;  %s51_s27 = sshll.u32 %s595_s26, 4  ;;  %s33_s25 = int_to_ptr.vmem [resolvable:$true] %s32_s25  ;;  %s649_s27 = int_to_ptr.vmem [resolvable:$true] %s51_s27 }
   0x5   :  { %s454_s30 = scalar_lea.hbm %s748_s1, 128 }
   0x6   :  { %p455_p0 = scmp.ne.s32.totalorder %s748_s1, %s454_s30  ;;  %p458_p1 = scmp.lt.u32.totalorder %s454_s30, %s748_s1 }
   0x8   :  { %p460_p2 = pnand %p458_p1, %p455_p0 }
   0xa   :  { %463 = shalt.err (!%p460_p2)
}
   0xb   :  { %s464_s12 = scalar_lea.vmem %s33_s25, 128  ;;  %p469_p4 = scmp.lt.s32.totalorder %s33_s25, %s33_s25 }
   0xc   :  { %p465_p3 = scmp.ne.s32.totalorder %s33_s25, %s464_s12  ;;  %p470_p5 = scmp.lt.s32.totalorder %s464_s12, %s464_s12 }
   0xe   :  { %p471_p6 = por %p470_p5, %p469_p4 }
  0x10   :  { %p472_p7 = pnand %p471_p6, %p465_p3 }
  0x12   :  { %475 = shalt.err (!%p472_p7)
}
  0x13   :  { %35 = dma.hbm_to_vmem [thread:$0]  %s748_s1, 128, %s33_s25, [#allocation6]  }
  0x14   :  { %s476_s17 = scalar_lea.hbm %s750_s3, 256 }
  0x15   :  { %p477_p8 = scmp.ne.s32.totalorder %s750_s3, %s476_s17  ;;  %p480_p9 = scmp.lt.u32.totalorder %s476_s17, %s750_s3 }
  0x17   :  { %p482_p10 = pnand %p480_p9, %p477_p8 }
  0x19   :  { %485 = shalt.err (!%p482_p10)
}
  0x1a   :  { %s486_s22 = scalar_lea.vmem %s649_s27, 256  ;;  %p491_p12 = scmp.lt.s32.totalorder %s649_s27, %s649_s27 }
  0x1b   :  { %p487_p11 = scmp.ne.s32.totalorder %s649_s27, %s486_s22  ;;  %p492_p13 = scmp.lt.s32.totalorder %s486_s22, %s486_s22 }
  0x1d   :  { %p493_p0 = por %p492_p13, %p491_p12 }
  0x1f   :  { %p494_p1 = pnand %p493_p0, %p487_p11 }
  0x21   :  { %497 = shalt.err (!%p494_p1)
}
  0x22   :  { %s596_s1 = smov 128   ;;  %s597_s23 = smov 8  }
  0x23   :  { %57 = dma.hbm_to_vmem [thread:$0]  %s750_s3, 256, %s649_s27, [#allocation9], %s596_s1, %s596_s1, %s597_s23  }
  0x24   :  { %s598_s26 = smov [#allocation2]   ;;  %s599_s29 = smov [#allocation7]  }
  0x25   :  { %s22_s28 = sshll.u32 %s598_s26, 4  ;;  %s42_s30 = sshll.u32 %s599_s29, 4  ;;  %s23_s28 = int_to_ptr.vmem [resolvable:$true] %s22_s28  ;;  %s43_s30 = int_to_ptr.vmem [resolvable:$true] %s42_s30 }
  0x26   :  { %s498_s10 = scalar_lea.hbm %s747_s0, 128 }
  0x27   :  { %p499_p2 = scmp.ne.s32.totalorder %s747_s0, %s498_s10  ;;  %p502_p3 = scmp.lt.u32.totalorder %s498_s10, %s747_s0 }
  0x29   :  { %p504_p4 = pnand %p502_p3, %p499_p2 }
  0x2b   :  { %507 = shalt.err (!%p504_p4)
}
  0x2c   :  { %s508_s3 = scalar_lea.vmem %s23_s28, 128  ;;  %p513_p6 = scmp.lt.s32.totalorder %s23_s28, %s23_s28 }
  0x2d   :  { %p509_p5 = scmp.ne.s32.totalorder %s23_s28, %s508_s3  ;;  %p514_p7 = scmp.lt.s32.totalorder %s508_s3, %s508_s3 }
  0x2f   :  { %p515_p8 = por %p514_p7, %p513_p6 }
  0x31   :  { %p516_p9 = pnand %p515_p8, %p509_p5 }
  0x33   :  { %519 = shalt.err (!%p516_p9)
}
  0x34   :  { %25 = dma.hbm_to_vmem [thread:$0]  %s747_s0, 128, %s23_s28, [#allocation3]  }
  0x35   :  { %s520_s18 = scalar_lea.hbm %s749_s2, 128 }
  0x36   :  { %p521_p10 = scmp.ne.s32.totalorder %s749_s2, %s520_s18  ;;  %p524_p11 = scmp.lt.u32.totalorder %s520_s18, %s749_s2 }
  0x38   :  { %p526_p12 = pnand %p524_p11, %p521_p10 }
  0x3a   :  { %529 = shalt.err (!%p526_p12)
}
  0x3b   :  { %s530_s24 = scalar_lea.vmem %s43_s30, 128  ;;  %p535_p0 = scmp.lt.s32.totalorder %s43_s30, %s43_s30 }
  0x3c   :  { %p531_p13 = scmp.ne.s32.totalorder %s43_s30, %s530_s24  ;;  %p536_p1 = scmp.lt.s32.totalorder %s530_s24, %s530_s24 }
  0x3e   :  { %p537_p2 = por %p536_p1, %p535_p0 }
  0x40   :  { %p538_p3 = pnand %p537_p2, %p531_p13 }
  0x42   :  { %541 = shalt.err (!%p538_p3)
}
  0x43   :  { %45 = dma.hbm_to_vmem [thread:$0]  %s749_s2, 128, %s43_s30, [#allocation6]  }
  0x44   :  { %s600_s26 = smov [#allocation10]   ;;  %s542_s9 = scalar_lea.hbm %s751_s4, 256 }
  0x45   :  { %s63_s28 = sshll.u32 %s600_s26, 4  ;;  %p543_p4 = scmp.ne.s32.totalorder %s751_s4, %s542_s9  ;;  %s64_s28 = int_to_ptr.vmem [resolvable:$true] %s63_s28 }
  0x46   :  { %p546_p5 = scmp.lt.u32.totalorder %s542_s9, %s751_s4 }
  0x48   :  { %p548_p6 = pnand %p546_p5, %p543_p4 }
  0x4a   :  { %551 = shalt.err (!%p548_p6)
}
  0x4b   :  { %s552_s14 = scalar_lea.vmem %s64_s28, 256  ;;  %p557_p8 = scmp.lt.s32.totalorder %s64_s28, %s64_s28 }
  0x4c   :  { %p553_p7 = scmp.ne.s32.totalorder %s64_s28, %s552_s14  ;;  %p558_p9 = scmp.lt.s32.totalorder %s552_s14, %s552_s14 }
  0x4e   :  { %p559_p10 = por %p558_p9, %p557_p8 }
  0x50   :  { %p560_p11 = pnand %p559_p10, %p553_p7 }
  0x52   :  { %563 = shalt.err (!%p560_p11)
}
  0x53   :  { %69 = dma.hbm_to_vmem [thread:$0]  %s751_s4, 256, %s64_s28, [#allocation9], %s596_s1, %s596_s1, %s597_s23  }
  0x54   :  { %586 = dma.done.wait [#allocation3], 128  }
  0x55   :  { %587 = vsyncadd [#allocation3], 4294967168 }
  0x56   :  { %588 = dma.done.wait [#allocation6], 256  }
  0x57   :  { %589 = vsyncadd [#allocation6], 4294967040 }
  0x58   :  { %590 = dma.done.wait [#allocation9], 512  }
  0x59   :  { %591 = vsyncadd [#allocation9], 4294966784  ;;  %v97_v0 = vlaneseq  ;;  %v89_v3 = vld [vmem:[#allocation5] sm:$0xff]  ;;  %v601_v4 = vmov 0.0   ;;  %s602_s3 = smov 12   ;;  %s603_s27 = smov 11  }
  0x5a   :  { %91 = vrot.lane.b32.xlu0 %v89_v3, %s602_s3  ;;  %v604_v7 = vmov 0.0|0.0   ;;  %vm90_vm1 = vcmask 1047648   ;;  %v131_v10 = vld [vmem:[#allocation10] sm:$0xff]  ;;  %v132_v11 = vld [vmem:[#allocation10 + $0x8] sm:$0xf]  ;;  %v129_v12 = vld [vmem:[#allocation8] sm:$0xff] }
  0x5b   :  { %v98_v1 = vand.u32 127, %v97_v0  ;;  %431 = vmatprep.subr.bf16.mxu0 %v604_v7  ;;  %435 = vmatprep.subr.bf16.mxu1 %v604_v7  ;;  %vm137_vm2 = vcmask 1043456   ;;  %v432_v13 = vpack.c.bf16 %v132_v11, %v131_v10  ;;  %v130_v14 = vld [vmem:[#allocation8 + $0x8] sm:$0xf]  ;;  %vm605_vm3 = vmmov 1   ;;  %s607_s4 = smov 117  }
  0x5c   :  { %vm433_vm4 = vmpackc.low %vm137_vm2, %vm605_vm3  ;;  %v436_v15 = vpack.c.bf16 %v130_v14, %v129_v12  ;;  %vm606_vm5 = vmmov 0   ;;  %vm133_vm6 = vcmask 97280   ;;  %v128_v16 = vld [vmem:[#allocation2] sm:$0xff]  ;;  %vm293_vm8 = vcmask 1044480   ;;  %v287_v26 = vld [vmem:[#allocation7] sm:$0xff] }
  0x5d   :  { %v103_v2 = vand.u32 1, %v98_v1  ;;  %434 = vmatpush3.bf16.msk.msra.mxu0 %vm433_vm4, %v432_v13  ;;  %416 = vmatprep.mubr.msk.f32.mxu0 %vm606_vm5, %v601_v4  ;;  %v288_v24 = vld [vmem:[%s752_s5] sm:$0x1f]  ;;  %vm289_vm9 = vcmask 39936   ;;  %s608_s5 = smov [#allocation11]   ;;  %vm377_vm10 = vcmask 392192  }
  0x5e   :  { %438 = vmatpush3.bf16.msk.msra.mxu1 %vm433_vm4, %v436_v15  ;;  %426 = vmatprep.subr.mxu0 %v601_v4  ;;  %v403_v33 = vld [vmem:[%s753_s6] ss:$0 sm:$0xff]  ;;  %s385_s17 = sshll.u32 %s608_s5, 4  ;;  %s386_s17 = int_to_ptr.vmem [resolvable:$true] %s385_s17 }
  0x5f   :  { %vm111_vm0 = vcmp.eq.s32.totalorder %v103_v2, 0  ;;  %423 = vmatprep.mubr.msk.f32.mxu1 %vm606_vm5, %v601_v4  ;;  %s564_s18 = scalar_lea.vmem %s386_s17, 128  ;;  %p569_p13 = scmp.lt.s32.totalorder %s386_s17, %s386_s17 }
  0x60   :  { %v396_v5 = vsel %vm111_vm0, 1.0, %v601_v4  ;;  %p565_p12 = scmp.ne.s32.totalorder %s386_s17, %s564_s18  ;;  %p570_p0 = scmp.lt.s32.totalorder %s564_s18, %s564_s18 }
  0x61   :  { %v115_v6 = vsub.f32 1.0, %v396_v5  ;;  %424 = vmatmul.mubr.msk.f32.vlgmr.msra.gmra.mrb[0].mxu1 %vm133_vm6, %v128_v16  ;;  %v114_v21 = vmul.f32 %v396_v5, %v89_v3 }
  0x62   :  { %p571_p1 = por %p570_p0, %p569_p13 }
  0x63   :  { %117 = vrot.lane.b32.xlu1 %v115_v6, %s603_s27 }
  0x64   :  { %p572_p2 = pnand %p571_p1, %p565_p12 }
  0xcc   :  { %v92_v8 = vpop.permute.xlu0 %91 }
  0xcd   :  { %v93_v9 = vsel %vm90_vm1, %v92_v8, %v89_v3 }
  0xce   :  { %94 = vrot.lane.b32.xlu0 %v93_v9, %s602_s3 }
  0xd5   :  { %v118_v17 = vpop.permute.xlu1 %117 }
 0x134   :  { %v283_v27 = vpop.f32.mrb[0].mxu1 }
 0x135   :  { %v425_v28 = vpop.f32.mrb[1].mxu1 }
 0x140   :  { %v95_v18 = vpop.permute.xlu0 %94 }
 0x141   :  { %v96_v19 = vsel %vm90_vm1, %v95_v18, %v89_v3 }
 0x142   :  { %v120_v20 = vmul.f32 %v118_v17, %v96_v19 }
 0x144   :  { %122 = vrot.lane.b32.xlu1 %v120_v20, %s607_s4 }
 0x1b6   :  { %v123_v22 = vpop.permute.xlu1 %122 }
 0x1b7   :  { %v125_v23 = vadd.f32 %v123_v22, %v114_v21 }
 0x1b9   :  { %vm126_vm7 = vcmp.lt.f32.partialorder %v125_v23, 0.0 }
 0x1ba   :  { %v127_v25 = vsel %vm126_vm7, 0.0, %v89_v3 }
 0x1bb   :  { %417 = vmatmul.mubr.msk.f32.vlgmr.msra.gmra.mrb[0].mxu0 %vm133_vm6, %v127_v25 }
 0x1bc   :  { %427 = vmatpush3.msk.msra.mxu0 %vm293_vm8, %v288_v24  ;;  %428 = vmatprep.mubr.msk.f32.mxu0 %vm606_vm5, %v601_v4 }
 0x1bf   :  { %429 = vmatmul.mubr.msk.f32.vlgmr.msra.gmra.mrb[2].mxu0 %vm289_vm9, %v287_v26 }
 0x28e   :  { %v207_v29 = vpop.f32.mrb[0].mxu0 }
 0x28f   :  { %v284_v30 = vadd.f32 %v283_v27, %v207_v29  ;;  %v418_v31 = vpop.f32.mrb[1].mxu0 }
 0x292   :  { %v363_v32 = vpop.f32.mrb[2].mxu0 }
 0x293   :  { %v367_v34 = vadd.f32 %v363_v32, %v284_v30  ;;  %v430_v35 = vpop.f32.mrb[3].mxu0 }
 0x295   :  { %v375_v36 = vadd.f32 %v403_v33, %v367_v34 }
 0x297   :  { %v376_v37 = vmax.f32 %v375_v36, 0.0 }
 0x299   :  { %378 = vst.msk [vmem:[#allocation11] sm:$0xff] %vm377_vm10, %v376_v37 }
 0x29a   :  { %575 = shalt.err (!%p572_p2)
}
 0x29b   :  { %s576_s6 = scalar_lea.hbm %s754_s7, 128 }
 0x29c   :  { %p577_p3 = scmp.ne.s32.totalorder %s754_s7, %s576_s6  ;;  %p580_p4 = scmp.lt.u32.totalorder %s576_s6, %s754_s7 }
 0x29e   :  { %p582_p5 = pnand %p580_p4, %p577_p3 }
 0x2a0   :  { %585 = shalt.err (!%p582_p5)
}
 0x2a1   :  { %388 = dma.vmem_to_hbm [thread:$0]  %s386_s17, 128, %s754_s7, [#allocation4]  }
 0x2a2   :  { %592 = dma.done.wait [#allocation4], 128  }
 0x2a3   :  { %593 = vsyncadd [#allocation4], 4294967168 }
 0x2a4   :  { %392 = vsyncpa [#allocation3], 1 }
 0x2a5   :  { %393 = vsyncpa [#allocation6], 1 }
 0x2a6   :  { %394 = vsyncpa [#allocation9], 1 }
 0x2a7   :  { %395 = vsyncpa [#allocation4], 1 }

</bundles_post_ra>
